<compile_context>
chip_gen: v7x
topology: tpu7x:2x2x1
jax: 0.10.0
libtpu: 0.0.40
codegen_flags: <defaults>
</compile_context>

<pallas_src>
import functools

import jax
import jax.numpy as jnp
from jax import lax
from jax.experimental import pallas as pl
from jax.experimental.pallas import tpu as pltpu

LANE = 128
VMEM_LIMIT_BYTES = 64 * 1024 * 1024  # <= v7x physical VMEM; fine on v5e/v6e


def _round_up(x, m):
    return (x + m - 1) // m * m


# --------------------------------------------------------------------------
# Kernels
# --------------------------------------------------------------------------

def linear_kernel(x_ref, w_ref, b_ref, h_ref):
    # H_tile = X_tile @ W + b   (bf16 MXU inputs, f32 accumulation)
    h = jnp.dot(x_ref[...], w_ref[...], preferred_element_type=jnp.float32)
    h = h + b_ref[...]
    h_ref[...] = h.astype(h_ref.dtype)


def aggregate_kernel(a_ref, h_ref, o_ref, acc_ref, *, num_valid_cols,
                     final_layer):
    # acc[i] += A[i, k] @ H[k]   over the reduction (k) grid axis.
    k = pl.program_id(1)

    @pl.when(k == 0)
    def _():
        acc_ref[...] = jnp.zeros_like(acc_ref)

    acc_ref[...] += jnp.dot(a_ref[...], h_ref[...],
                            preferred_element_type=jnp.float32)

    @pl.when(k == pl.num_programs(1) - 1)
    def _():
        out = jnp.maximum(acc_ref[...], 0.0)  # ReLU (matches reference model)
        if final_layer:
            # Mask padded class columns, then row-wise log_softmax in f32.
            col = lax.broadcasted_iota(jnp.int32, out.shape, 1)
            out = jnp.where(col < num_valid_cols, out, -1e30)
            m = jnp.max(out, axis=1, keepdims=True)
            lse = jnp.log(jnp.sum(jnp.exp(out - m), axis=1, keepdims=True)) + m
            out = out - lse
        o_ref[...] = out.astype(o_ref.dtype)


# --------------------------------------------------------------------------
# Pallas-call wrappers
# --------------------------------------------------------------------------

def _pallas_linear(x_bf16, w_bf16, b_f32, tm):
    n_pad, f_pad = x_bf16.shape
    d_pad = w_bf16.shape[1]
    return pl.pallas_call(
        linear_kernel,
        out_shape=jax.ShapeDtypeStruct((n_pad, d_pad), jnp.bfloat16),
        grid=(n_pad // tm,),
        in_specs=[
            pl.BlockSpec((tm, f_pad), lambda i: (i, 0)),      # X row tile
            pl.BlockSpec((f_pad, d_pad), lambda i: (0, 0)),   # W (resident)
            pl.BlockSpec((1, d_pad), lambda i: (0, 0)),       # bias
        ],
        out_specs=pl.BlockSpec((tm, d_pad), lambda i: (i, 0)),
        compiler_params=pltpu.CompilerParams(
            dimension_semantics=("parallel",),
            vmem_limit_bytes=VMEM_LIMIT_BYTES),
    )(x_bf16, w_bf16, b_f32)


def _pallas_aggregate(a_bf16, h_bf16, tm, tk, *, num_valid_cols, final_layer,
                      out_dtype):
    n_pad = a_bf16.shape[0]
    d_pad = h_bf16.shape[1]
    kernel = functools.partial(aggregate_kernel,
                               num_valid_cols=num_valid_cols,
                               final_layer=final_layer)
    # Note: the A tile is the only large streaming input; if DMA-exposed,
    # sweep pipeline_mode=pl.Buffered(3) on its BlockSpec (default 2 here).
    return pl.pallas_call(
        kernel,
        out_shape=jax.ShapeDtypeStruct((n_pad, d_pad), out_dtype),
        grid=(n_pad // tm, n_pad // tk),
        in_specs=[
            pl.BlockSpec((tm, tk), lambda i, k: (i, k)),       # A tile
            pl.BlockSpec((tk, d_pad), lambda i, k: (k, 0)),    # H tile
        ],
        out_specs=pl.BlockSpec((tm, d_pad), lambda i, k: (i, 0)),
        scratch_shapes=[pltpu.VMEM((tm, d_pad), jnp.float32)],
        compiler_params=pltpu.CompilerParams(
            dimension_semantics=("parallel", "arbitrary"),
            vmem_limit_bytes=VMEM_LIMIT_BYTES),
    )(a_bf16, h_bf16)


# --------------------------------------------------------------------------
# GCN forward
# --------------------------------------------------------------------------

def build_norm_adjacency(edge_index, num_nodes, dtype=jnp.float32):
    """Dense normalized adjacency matching the PyG GCNLayer semantics."""
    loops = jnp.arange(num_nodes, dtype=edge_index.dtype)
    ei = jnp.concatenate([edge_index, jnp.stack([loops, loops])], axis=1)
    row, col = ei[0], ei[1]                       # row = source, col = target
    deg = jnp.zeros((num_nodes,), dtype).at[col].add(jnp.asarray(1.0, dtype))
    deg_inv_sqrt = deg ** -0.5
    norm = deg_inv_sqrt[row] * deg_inv_sqrt[col]
    # out[target] += norm * x_lin[source]  =>  A[target, source] = norm
    a = jnp.zeros((num_nodes, num_nodes), dtype).at[col, row].add(norm)
    return a


def gcn_forward(x, edge_index, w1, b1, w2, b2):
    n, f = x.shape
    h_dim = w1.shape[0]
    c = w2.shape[0]

    # ---- tile sizes (lane/sublane aligned, VMEM-budgeted for v7x) ----
    if n >= 512:
        tk = 512          # A reduction tile (lane dim of A block)
        tm = 256          # output row tile
    else:
        tk = _round_up(n, LANE)
        tm = tk
    n_pad = _round_up(n, tk)          # divisible by both tk and tm
    f_pad = _round_up(f, LANE)
    d_pad = LANE                      # padded hidden / class width

    # ---- dense normalized adjacency, padded & cast to bf16 ----
    a = build_norm_adjacency(edge_index, n, jnp.float32)
    a = jnp.pad(a, ((0, n_pad - n), (0, n_pad - n))).astype(jnp.bfloat16)

    x_p = jnp.pad(x, ((0, n_pad - n), (0, f_pad - f))).astype(jnp.bfloat16)

    # nn.Linear weights are (out, in); pre-transpose and lane-pad.
    w1t = jnp.pad(w1.T, ((0, f_pad - f), (0, d_pad - h_dim))).astype(jnp.bfloat16)
    b1r = jnp.pad(b1.reshape(1, -1), ((0, 0), (0, d_pad - h_dim))).astype(jnp.float32)
    w2t = jnp.pad(w2.T, ((0, d_pad - h_dim), (0, d_pad - c))).astype(jnp.bfloat16)
    b2r = jnp.pad(b2.reshape(1, -1), ((0, 0), (0, d_pad - c))).astype(jnp.float32)

    # ---- layer 1: relu(A @ (X @ W1 + b1)) ----   (X@W first: F > H)
    xw1 = _pallas_linear(x_p, w1t, b1r, tm)
    h1 = _pallas_aggregate(a, xw1, tm, tk, num_valid_cols=d_pad,
                           final_layer=False, out_dtype=jnp.bfloat16)

    # ---- layer 2: log_softmax(relu(A @ (H1 @ W2 + b2))) ----
    hw2 = _pallas_linear(h1, w2t, b2r, tm)
    out = _pallas_aggregate(a, hw2, tm, tk, num_valid_cols=c,
                            final_layer=True, out_dtype=jnp.float32)

    return out[:n, :c]


# --------------------------------------------------------------------------
# Reference (pure JAX, f32) for correctness check
# --------------------------------------------------------------------------

def gcn_reference(x, edge_index, w1, b1, w2, b2):
    a = build_norm_adjacency(edge_index, x.shape[0], jnp.float32)
    h = jnp.maximum(a @ (x @ w1.T + b1), 0.0)
    h = jnp.maximum(a @ (h @ w2.T + b2), 0.0)
    m = jnp.max(h, axis=1, keepdims=True)
    lse = jnp.log(jnp.sum(jnp.exp(h - m), axis=1, keepdims=True)) + m
    return h - lse


def init_linear(key, out_features, in_features):
    """Deterministic nn.Linear-style init: U(-1/sqrt(in), 1/sqrt(in))."""
    kw, kb = jax.random.split(key)
    bound = 1.0 / jnp.sqrt(jnp.asarray(in_features, jnp.float32))
    w = jax.random.uniform(kw, (out_features, in_features), jnp.float32,
                           minval=-bound, maxval=bound)
    b = jax.random.uniform(kb, (out_features,), jnp.float32,
                           minval=-bound, maxval=bound)
    return w, b


if __name__ == "__main__":
    key = jax.random.PRNGKey(0)
    k_x, k_e, k_l1, k_l2 = jax.random.split(key, 4)

    # Small synthetic "Cora-like" graph.
    num_nodes = 64
    num_features = 32
    hidden = 16
    num_classes = 8
    num_edges = 256

    x = jax.random.normal(k_x, (num_nodes, num_features), jnp.float32)
    edge_index = jax.random.randint(k_e, (2, num_edges), 0, num_nodes,
                                    dtype=jnp.int32)

    w1, b1 = init_linear(k_l1, hidden, num_features)       # GCNLayer(F -> 16)
    w2, b2 = init_linear(k_l2, num_classes, hidden)        # GCNLayer(16 -> C)

    out = gcn_forward(x, edge_index, w1, b1, w2, b2)
    jax.block_until_ready(out)

    assert out.shape == (num_nodes, num_classes)
    assert bool(jnp.all(jnp.isfinite(out)))
    # rows of log_softmax should exponentiate-sum to 1
    assert bool(jnp.allclose(jnp.sum(jnp.exp(out), axis=1), 1.0, atol=2e-3))
    # match f32 reference within bf16-matmul tolerance
    ref = gcn_reference(x, edge_index, w1, b1, w2, b2)
    assert bool(jnp.max(jnp.abs(out - ref)) < 0.25)

    print("KERNEL_OK")
</pallas_src>

<mosaic_0001>
module attributes {stable_mosaic.version = 11 : i64} {
  func.func @linear_kernel(%arg0: i32, %arg1: memref<128x128xbf16, #tpu.memory_space<vmem>>, %arg2: memref<128x128xbf16, #tpu.memory_space<vmem>>, %arg3: memref<1x128xf32, #tpu.memory_space<vmem>>, %arg4: memref<128x128xbf16, #tpu.memory_space<vmem>>) attributes {dimension_semantics = [#tpu.dimension_semantics<parallel>], iteration_bounds = array<i64: 1>, scalar_prefetch = 0 : i64, scratch_operands = 0 : i64, tpu.core_type = #tpu.core_type<tc>, window_params = [{transform_indices = @transform_0, window_bounds = array<i64: 128, 128>}, {pipeline_mode = #tpu.pipeline_mode<synchronous>, transform_indices = @transform_1, window_bounds = array<i64: 128, 128>}, {pipeline_mode = #tpu.pipeline_mode<synchronous>, transform_indices = @transform_2, window_bounds = array<i64: 1, 128>}, {transform_indices = @transform_3, window_bounds = array<i64: 128, 128>}]} {
    %c0 = arith.constant 0 : index
    %c0_0 = arith.constant 0 : index
    %0 = vector.load %arg1[%c0, %c0_0] : memref<128x128xbf16, #tpu.memory_space<vmem>>, vector<128x128xbf16>
    %c0_1 = arith.constant 0 : index
    %c0_2 = arith.constant 0 : index
    %1 = vector.load %arg2[%c0_1, %c0_2] : memref<128x128xbf16, #tpu.memory_space<vmem>>, vector<128x128xbf16>
    %cst = arith.constant dense<0.000000e+00> : vector<128x128xf32>
    %2 = tpu.matmul %0, %1, %cst {dimension_numbers = #tpu.dot_dimension_numbers<[1], [0], [0], [1], [0, 0, 1, 1], [], []>} : vector<128x128xbf16>, vector<128x128xbf16>, vector<128x128xf32> -> vector<128x128xf32>
    %c0_3 = arith.constant 0 : index
    %c0_4 = arith.constant 0 : index
    %3 = vector.load %arg3[%c0_3, %c0_4] : memref<1x128xf32, #tpu.memory_space<vmem>>, vector<1x128xf32>
    %4 = vector.broadcast %3 : vector<1x128xf32> to vector<128x128xf32>
    %5 = arith.addf %2, %4 : vector<128x128xf32>
    %6 = arith.truncf %5 : vector<128x128xf32> to vector<128x128xbf16>
    %c0_5 = arith.constant 0 : index
    %c0_6 = arith.constant 0 : index
    %7 = vector.load %arg4[%c0_5, %c0_6] : memref<128x128xbf16, #tpu.memory_space<vmem>>, vector<128x128xbf16>
    tpu.vector_store %arg4[%c0_5, %c0_6], %6 {strides = array<i32>} : memref<128x128xbf16, #tpu.memory_space<vmem>>, vector<128x128xbf16>,
    return
  }
  func.func @transform_0(%arg0: i32) -> (i32, i32) {
    %c0_i32 = arith.constant 0 : i32
    %c0_i32_0 = arith.constant 0 : i32
    return %arg0, %c0_i32 : i32, i32
  }
  func.func @transform_1(%arg0: i32) -> (i32, i32) {
    %c0_i32 = arith.constant 0 : i32
    %c0_i32_0 = arith.constant 0 : i32
    %c0_i32_1 = arith.constant 0 : i32
    return %c0_i32, %c0_i32_0 : i32, i32
  }
  func.func @transform_2(%arg0: i32) -> (i32, i32) {
    %c0_i32 = arith.constant 0 : i32
    %c0_i32_0 = arith.constant 0 : i32
    %c0_i32_1 = arith.constant 0 : i32
    return %c0_i32, %c0_i32_0 : i32, i32
  }
  func.func @transform_3(%arg0: i32) -> (i32, i32) {
    %c0_i32 = arith.constant 0 : i32
    %c0_i32_0 = arith.constant 0 : i32
    return %arg0, %c0_i32 : i32, i32
  }
}

</mosaic_0001>

<bundles_post_ra>
// kernel: tpu_custom_call.1
= control target key start
LH: loop header
LB: loop body
LE: loop exit
PB: predicated region body
PF: predicated region fallthrough
CT: control target
= control target key end

     0   :  { %8 = vsyncpa [#allocation3], 0  ;;  %s751_s0 = inlined_call_operand.hbm [shape: bf16[128,128], index: 0, kind: input, shape index: {}]   ;;  %s752_s1 = inlined_call_operand.hbm [shape: bf16[128,128], index: 1, kind: input, shape index: {}]   ;;  %s753_s2 = inlined_call_operand.hbm [shape: f32[1,128], index: 2, kind: input, shape index: {}]   ;;  %s754_s3 = inlined_call_operand.hbm [shape: bf16[128,128], index: 3, kind: output, shape index: {}]  }
   0x1   :  { %9 = vsyncpa [#allocation6], 0 }
   0x2   :  { %10 = vsyncpa [#allocation4], 0  ;;  %s661_s12 = smov [#allocation5]   ;;  %s662_s14 = smov [#allocation2]  }
   0x3   :  { %s28_s13 = sshll.u32 %s661_s12, 4  ;;  %s16_s15 = sshll.u32 %s662_s14, 4  ;;  %s29_s13 = int_to_ptr.vmem [resolvable:$true] %s28_s13  ;;  %s687_s15 = int_to_ptr.vmem [resolvable:$true] %s16_s15 }
   0x4   :  { %s567_s18 = scalar_lea.hbm %s752_s1, 1024 }
   0x5   :  { %p568_p0 = scmp.ne.s32.totalorder %s752_s1, %s567_s18  ;;  %p571_p1 = scmp.lt.u32.totalorder %s567_s18, %s752_s1 }
   0x7   :  { %p573_p2 = pnand %p571_p1, %p568_p0 }
   0x9   :  { %576 = shalt.err (!%p573_p2)
}
   0xa   :  { %s577_s23 = scalar_lea.vmem %s29_s13, 1024  ;;  %p582_p4 = scmp.lt.s32.totalorder %s29_s13, %s29_s13 }
   0xb   :  { %p578_p3 = scmp.ne.s32.totalorder %s29_s13, %s577_s23  ;;  %p583_p5 = scmp.lt.s32.totalorder %s577_s23, %s577_s23 }
   0xd   :  { %p584_p6 = por %p583_p5, %p582_p4 }
   0xf   :  { %p585_p7 = pnand %p584_p6, %p578_p3 }
  0x11   :  { %588 = shalt.err (!%p585_p7)
}
  0x12   :  { %s663_s24 = smov 64   ;;  %s664_s25 = smov 4  }
  0x13   :  { %34 = dma.hbm_to_vmem [thread:$0]  %s752_s1, 1024, %s29_s13, [#allocation6], %s663_s24, %s663_s24, %s664_s25  }
  0x14   :  { %s589_s30 = scalar_lea.hbm %s751_s0, 1024 }
  0x15   :  { %p590_p8 = scmp.ne.s32.totalorder %s751_s0, %s589_s30  ;;  %p593_p9 = scmp.lt.u32.totalorder %s589_s30, %s751_s0 }
  0x17   :  { %p595_p10 = pnand %p593_p9, %p590_p8 }
  0x19   :  { %598 = shalt.err (!%p595_p10)
}
  0x1a   :  { %s599_s8 = scalar_lea.vmem %s687_s15, 1024  ;;  %p604_p12 = scmp.lt.s32.totalorder %s687_s15, %s687_s15 }
  0x1b   :  { %p600_p11 = scmp.ne.s32.totalorder %s687_s15, %s599_s8  ;;  %p605_p13 = scmp.lt.s32.totalorder %s599_s8, %s599_s8 }
  0x1d   :  { %p606_p0 = por %p605_p13, %p604_p12 }
  0x1f   :  { %p607_p1 = pnand %p606_p0, %p600_p11 }
  0x21   :  { %610 = shalt.err (!%p607_p1)
}
  0x22   :  { %22 = dma.hbm_to_vmem [thread:$0]  %s751_s0, 1024, %s687_s15, [#allocation3], %s663_s24, %s663_s24, %s664_s25  }
  0x23   :  { %s665_s10 = smov [#allocation7]   ;;  %s611_s14 = scalar_lea.hbm %s753_s2, 16 }
  0x24   :  { %s41_s11 = sshll.u32 %s665_s10, 4  ;;  %p612_p2 = scmp.ne.s32.totalorder %s753_s2, %s611_s14  ;;  %s42_s11 = int_to_ptr.vmem [resolvable:$true] %s41_s11 }
  0x25   :  { %p615_p3 = scmp.lt.u32.totalorder %s611_s14, %s753_s2 }
  0x27   :  { %p617_p4 = pnand %p615_p3, %p612_p2 }
  0x29   :  { %620 = shalt.err (!%p617_p4)
}
  0x2a   :  { %s621_s20 = scalar_lea.vmem %s42_s11, 16  ;;  %s625_s0 = scalar_lea.vmem %s42_s11, 32 }
  0x2b   :  { %p622_p5 = scmp.ne.s32.totalorder %s42_s11, %s621_s20  ;;  %p626_p6 = scmp.lt.s32.totalorder %s42_s11, %s42_s11 }
  0x2c   :  { %p627_p7 = scmp.lt.s32.totalorder %s625_s0, %s621_s20 }
  0x2e   :  { %p628_p8 = por %p627_p7, %p626_p6 }
  0x30   :  { %p629_p9 = pnand %p628_p8, %p622_p5 }
  0x32   :  { %632 = shalt.err (!%p629_p9)
}
  0x33   :  { %44 = dma.hbm_to_vmem [thread:$0]  %s753_s2, 16, %s42_s11, [#allocation6]  }
  0x34   :  { %655 = dma.done.wait [#allocation3], 1024  }
  0x35   :  { %656 = vsyncadd [#allocation3], 4294966272 }
  0x36   :  { %657 = dma.done.wait [#allocation6], 1040  }
  0x37   :  { %658 = vsyncadd [#allocation6], 4294966256  ;;  %v551_v0 = vld [vmem:[#allocation5] sm:$0xff]   ;;  %v552_v1 = vld [vmem:[#allocation5 + $0x8] sm:$0xff]   ;;  %s666_s2 = smov [#allocation8]  }
  0x38   :  { %497 = vmatprep.subr.bf16.mxu0 %v551_v0  ;;  %529 = vmatprep.subr.bf16.mxu1 %v551_v0  ;;  %v553_v2 = vld [vmem:[#allocation5 + $0x10] sm:$0xff]   ;;  %v554_v3 = vld [vmem:[#allocation5 + $0x18] sm:$0xff]   ;;  %v559_v4 = vld [vmem:[#allocation2] sm:$0xff]   ;;  %s372_s22 = sshll.u32 %s666_s2, 4  ;;  %s373_s22 = int_to_ptr.vmem [resolvable:$true] %s372_s22 }
  0x39   :  { %498 = vmatpush3.bf16.msra.mxu0 %v551_v0  ;;  %537 = vmatpush3.bf16.msra.mxu1 %v551_v0  ;;  %v560_v5 = vld [vmem:[#allocation2 + $0x20] sm:$0xff]   ;;  %v556_v7 = vld [vmem:[#allocation5 + $0x28] sm:$0xff]   ;;  %v557_v8 = vld [vmem:[#allocation5 + $0x30] sm:$0xff]   ;;  %s633_s23 = scalar_lea.vmem %s373_s22, 1024  ;;  %p638_p11 = scmp.lt.s32.totalorder %s373_s22, %s373_s22 }
  0x3a   :  { %499 = vmatprep.subr.bf16.mxu0 %v552_v1  ;;  %530 = vmatprep.subr.bf16.mxu1 %v552_v1  ;;  %v555_v6 = vld [vmem:[#allocation5 + $0x20] sm:$0xff]   ;;  %v558_v9 = vld [vmem:[#allocation5 + $0x38] sm:$0xff]   ;;  %v561_v10 = vld [vmem:[#allocation2 + $0x8] sm:$0xff]   ;;  %p634_p10 = scmp.ne.s32.totalorder %s373_s22, %s633_s23  ;;  %p639_p12 = scmp.lt.s32.totalorder %s633_s23, %s633_s23 }
  0x3b   :  { %513 = vmatprep.mubr.bf16.mxu0 %v559_v4  ;;  %521 = vmatprep.mubr.bf16.mxu1 %v560_v5  ;;  %v562_v11 = vld [vmem:[#allocation2 + $0x28] sm:$0xff]   ;;  %v563_v12 = vld [vmem:[#allocation2 + $0x10] sm:$0xff]   ;;  %v565_v14 = vld [vmem:[#allocation2 + $0x18] sm:$0xff]  }
  0x3c   :  { %v564_v13 = vld [vmem:[#allocation2 + $0x30] sm:$0xff]   ;;  %v566_v15 = vld [vmem:[#allocation2 + $0x38] sm:$0xff]   ;;  %v385_v17 = vld [vmem:[#allocation7] ss:$0 sm:$0xff]  ;;  %p640_p13 = por %p639_p12, %p638_p11 }
  0x3d   :  { %500 = vmatpush3.bf16.msra.mxu0 %v552_v1  ;;  %538 = vmatpush3.bf16.msra.mxu1 %v552_v1 }
  0x3e   :  { %501 = vmatprep.subr.bf16.mxu0 %v553_v2  ;;  %531 = vmatprep.subr.bf16.mxu1 %v553_v2  ;;  %p641_p0 = pnand %p640_p13, %p634_p10 }
  0x41   :  { %502 = vmatpush3.bf16.msra.mxu0 %v553_v2  ;;  %539 = vmatpush3.bf16.msra.mxu1 %v553_v2 }
  0x42   :  { %503 = vmatprep.subr.bf16.mxu0 %v554_v3  ;;  %532 = vmatprep.subr.bf16.mxu1 %v554_v3 }
  0x45   :  { %504 = vmatpush3.bf16.msra.mxu0 %v554_v3  ;;  %540 = vmatpush3.bf16.msra.mxu1 %v554_v3 }
  0x46   :  { %505 = vmatprep.subr.bf16.mxu0 %v555_v6  ;;  %533 = vmatprep.subr.bf16.mxu1 %v555_v6 }
  0x49   :  { %506 = vmatpush3.bf16.msra.mxu0 %v555_v6  ;;  %541 = vmatpush3.bf16.msra.mxu1 %v555_v6 }
  0x4a   :  { %507 = vmatprep.subr.bf16.mxu0 %v556_v7  ;;  %534 = vmatprep.subr.bf16.mxu1 %v556_v7 }
  0x4d   :  { %508 = vmatpush3.bf16.msra.mxu0 %v556_v7  ;;  %542 = vmatpush3.bf16.msra.mxu1 %v556_v7 }
  0x4e   :  { %509 = vmatprep.subr.bf16.mxu0 %v557_v8  ;;  %535 = vmatprep.subr.bf16.mxu1 %v557_v8 }
  0x51   :  { %510 = vmatpush3.bf16.msra.mxu0 %v557_v8  ;;  %543 = vmatpush3.bf16.msra.mxu1 %v557_v8 }
  0x52   :  { %511 = vmatprep.subr.bf16.mxu0 %v558_v9  ;;  %536 = vmatprep.subr.bf16.mxu1 %v558_v9 }
  0x55   :  { %512 = vmatpush3.bf16.msra.mxu0 %v558_v9  ;;  %544 = vmatpush3.bf16.msra.mxu1 %v558_v9 }
  0x58   :  { %514 = vmatmul.mubr.bf16.vlgmr.msra.gmra.mrb[0].mxu0 %v561_v10  ;;  %522 = vmatmul.mubr.bf16.vlgmr.msra.gmra.mrb[0].mxu1 %v562_v11 }
  0x59   :  { %517 = vmatprep.mubr.bf16.mxu0 %v563_v12  ;;  %525 = vmatprep.mubr.bf16.mxu1 %v564_v13 }
  0x60   :  { %518 = vmatmul.mubr.bf16.gmra.mrb[4].mxu0 %v565_v14  ;;  %526 = vmatmul.mubr.bf16.gmra.mrb[4].mxu1 %v566_v15 }
 0x12b   :  { %v515_v16 = vpop.f32.mrb[0].mxu0  ;;  %v523_v18 = vpop.f32.mrb[0].mxu1 }
 0x12c   :  { %v224_v19 = vpop.f32.mrb[1].mxu0  ;;  %v256_v20 = vpop.f32.mrb[1].mxu1  ;;  %v233_v23 = vadd.f32 %v515_v16, %v385_v17  ;;  %v265_v24 = vadd.f32 %v523_v18, %v385_v17 }
 0x12d   :  { %v516_v21 = vpop.f32.mrb[2].mxu0  ;;  %v524_v22 = vpop.f32.mrb[2].mxu1  ;;  %v225_v29 = vadd.f32 %v385_v17, %v224_v19  ;;  %v257_v30 = vadd.f32 %v385_v17, %v256_v20 }
 0x12e   :  { %v236_v25 = vadd.f32 %v516_v21, %v385_v17  ;;  %v268_v26 = vadd.f32 %v524_v22, %v385_v17  ;;  %v227_v27 = vpop.f32.mrb[3].mxu0  ;;  %v259_v28 = vpop.f32.mrb[3].mxu1 }
 0x12f   :  { %v228_v31 = vadd.f32 %v385_v17, %v227_v27  ;;  %v260_v32 = vadd.f32 %v385_v17, %v259_v28 }
 0x130   :  { %v442_v33 = vpack.c.bf16 %v236_v25, %v233_v23  ;;  %v462_v34 = vpack.c.bf16 %v268_v26, %v265_v24 }
 0x131   :  { %v437_v35 = vpack.c.bf16 %v228_v31, %v225_v29  ;;  %v457_v36 = vpack.c.bf16 %v260_v32, %v257_v30 }
 0x132   :  { %474 = vst [vmem:[#allocation8 + $0x8] sm:$0xff] %v442_v33   ;;  %478 = vst [vmem:[#allocation8 + $0x28] sm:$0xff] %v462_v34  }
 0x133   :  { %438 = vst [vmem:[#allocation8] sm:$0xff] %v437_v35   ;;  %477 = vst [vmem:[#allocation8 + $0x20] sm:$0xff] %v457_v36   ;;  %v519_v37 = vpop.f32.mrb[4].mxu0  ;;  %v527_v38 = vpop.f32.mrb[4].mxu1 }
 0x134   :  { %v240_v39 = vpop.f32.mrb[5].mxu0  ;;  %v272_v40 = vpop.f32.mrb[5].mxu1  ;;  %v249_v43 = vadd.f32 %v519_v37, %v385_v17  ;;  %v281_v44 = vadd.f32 %v527_v38, %v385_v17 }
 0x135   :  { %v520_v41 = vpop.f32.mrb[6].mxu0  ;;  %v528_v42 = vpop.f32.mrb[6].mxu1  ;;  %v241_v49 = vadd.f32 %v385_v17, %v240_v39  ;;  %v273_v50 = vadd.f32 %v385_v17, %v272_v40 }
 0x136   :  { %v252_v45 = vadd.f32 %v520_v41, %v385_v17  ;;  %v284_v46 = vadd.f32 %v528_v42, %v385_v17  ;;  %v243_v47 = vpop.f32.mrb[7].mxu0  ;;  %v275_v48 = vpop.f32.mrb[7].mxu1 }
 0x137   :  { %v244_v51 = vadd.f32 %v385_v17, %v243_v47  ;;  %v276_v52 = vadd.f32 %v385_v17, %v275_v48 }
 0x138   :  { %v452_v53 = vpack.c.bf16 %v252_v45, %v249_v43  ;;  %v472_v54 = vpack.c.bf16 %v284_v46, %v281_v44 }
 0x139   :  { %v447_v55 = vpack.c.bf16 %v244_v51, %v241_v49  ;;  %v467_v56 = vpack.c.bf16 %v276_v52, %v273_v50 }
 0x13a   :  { %476 = vst [vmem:[#allocation8 + $0x18] sm:$0xff] %v452_v53   ;;  %480 = vst [vmem:[#allocation8 + $0x38] sm:$0xff] %v472_v54  }
 0x13b   :  { %475 = vst [vmem:[#allocation8 + $0x10] sm:$0xff] %v447_v55   ;;  %479 = vst [vmem:[#allocation8 + $0x30] sm:$0xff] %v467_v56  }
 0x13c   :  { %644 = shalt.err (!%p641_p0)
}
 0x13d   :  { %s645_s28 = scalar_lea.hbm %s754_s3, 1024 }
 0x13e   :  { %p646_p1 = scmp.ne.s32.totalorder %s754_s3, %s645_s28  ;;  %p649_p2 = scmp.lt.u32.totalorder %s645_s28, %s754_s3 }
 0x140   :  { %p651_p3 = pnand %p649_p2, %p646_p1 }
 0x142   :  { %654 = shalt.err (!%p651_p3)
}
 0x143   :  { %378 = dma.vmem_to_hbm [thread:$0]  %s373_s22, 1024, %s754_s3, [#allocation4], %s663_s24, %s663_s24, %s664_s25  }
 0x144   :  { %659 = dma.done.wait [#allocation4], 1024  }
 0x145   :  { %660 = vsyncadd [#allocation4], 4294966272 }
 0x146   :  { %382 = vsyncpa [#allocation3], 1 }
 0x147   :  { %383 = vsyncpa [#allocation6], 1 }
 0x148   :  { %384 = vsyncpa [#allocation4], 1 }

</bundles_post_ra>
